<compile_context>
chip_gen: v6e
topology: v6e:2x2x1
jax: 0.10.0
libtpu: 0.0.40
codegen_flags: <defaults>
</compile_context>

<pallas_src>
import jax
import jax.numpy as jnp
from jax.experimental import pallas as pl
from jax.experimental.pallas import tpu as pltpu


def _make_kernel(fold, use_roll):
    """Kernel body: temporal shift on the resident T axis + fused Linear."""

    def kernel(x_ref, w_ref, b_ref, o_ref):
        xt = x_ref[0]                               # (T, hw_t, c), compute dtype
        T_, hw_t, c_ = xt.shape
        m = T_ * hw_t
        # Layout-preserving (hw_t is a multiple of the sublane packing).
        x2d = xt.reshape(m, c_)

        if use_roll:
            # nxt[r] = x2d[(r + hw_t) % m]  -> rows of frame t+1 (wrap zeroed below)
            nxt = pltpu.roll(x2d, shift=m - hw_t, axis=0)
            # prv[r] = x2d[(r - hw_t) % m]  -> rows of frame t-1
            prv = pltpu.roll(x2d, shift=hw_t, axis=0)
            row = jax.lax.broadcasted_iota(jnp.int32, (m, 1), 0)
            zero = jnp.zeros((), dtype=x2d.dtype)
            nxt = jnp.where(row < (T_ - 1) * hw_t, nxt, zero)   # t == T-1 -> 0
            prv = jnp.where(row >= hw_t, prv, zero)             # t == 0   -> 0
        else:
            # Fallback construction (known-good lowering path).
            z = jnp.zeros((hw_t, c_), dtype=x2d.dtype)
            nxt = jnp.concatenate([x2d[hw_t:], z], axis=0)
            prv = jnp.concatenate([z, x2d[:m - hw_t]], axis=0)

        ch = jax.lax.broadcasted_iota(jnp.int32, (1, c_), 1)
        shifted = jnp.where(ch < fold, nxt,
                            jnp.where(ch < 2 * fold, prv, x2d))

        y = jnp.dot(shifted, w_ref[...], preferred_element_type=jnp.float32)
        y = y + b_ref[...]
        o_ref[0] = y.reshape(T_, hw_t, -1).astype(o_ref.dtype)

    return kernel


def _vmem_capacity_bytes():
    """Physical VMEM per TensorCore; conservative 64 MiB if the query fails."""
    cap = 64 << 20
    try:
        info = pltpu.get_tpu_info()
        cap = int(getattr(info, "vmem_capacity_bytes", cap))
    except Exception:
        pass
    return cap


def temporal_shift_net(x, W, bias, *, num_frames, fold_div,
                       compute_dtype=jnp.bfloat16):
    """TemporalShift.shift followed by a fused Linear(c -> c_out).

    x: (nt, hw, c).  W: (c, c_out).  bias: (c_out,).
    """
    nt, hw, c = x.shape
    assert nt % num_frames == 0
    b = nt // num_frames
    T = num_frames
    fold = c // fold_div
    assert 2 * fold <= c, "fold_div must satisfy 2*(c//fold_div) <= c"
    c_out = W.shape[1]
    out_dtype = x.dtype

    comp_size = jnp.dtype(compute_dtype).itemsize
    out_size = jnp.dtype(out_dtype).itemsize
    # Sublane packing of the compute dtype: 8 rows for 32-bit, 16 for 16-bit.
    align = max(8, 32 // comp_size)

    # Lane-dense output: pad c_out up to a multiple of 128 (no-op at 128).
    c_out_p = -(-c_out // 128) * 128
    Wc = W.astype(compute_dtype)
    bc = bias.astype(jnp.float32)
    if c_out_p != c_out:
        Wc = jnp.pad(Wc, ((0, 0), (0, c_out_p - c_out)))
        bc = jnp.pad(bc, (0, c_out_p - c_out))
    bias2 = bc.reshape(1, c_out_p)

    # Pad hw so every tile is a whole number of packed sublanes.
    hw_p = -(-hw // align) * align
    x4 = x.astype(compute_dtype).reshape(b, T, hw, c)
    if hw_p != hw:
        x4 = jnp.pad(x4, ((0, 0), (0, 0), (0, hw_p - hw), (0, 0)))

    # ---- generation-aware VMEM budgeting --------------------------------
    cap = _vmem_capacity_bytes()
    if cap >= (100 << 20):            # v5e / v6e: 128 MiB physical VMEM
        budget = 56 << 20
        vmem_limit = 100 << 20
    else:                              # v7x: 64 MiB per TensorCore
        budget = min(32 << 20, cap // 2)
        vmem_limit = min(48 << 20, (cap * 3) // 4)

    def footprint(d):
        """Honest per-step VMEM use: double-buffered pallas streams PLUS the
        in-kernel temporaries (rolled/shift operands ~3x input block, the f32
        accumulator, and the output-cast copy)."""
        in_blk = T * d * c * comp_size
        out_blk = T * d * c_out_p * out_size
        acc_blk = T * d * c_out_p * 4
        w_blk = c * c_out_p * comp_size + c_out_p * 4
        return 2 * (in_blk + out_blk + w_blk) + 3 * in_blk + acc_blk + out_blk

    # hw_tile: largest multiple-of-`align` divisor of hw_p that fits the
    # budget; the smallest candidate (== align) is always legal.
    cands = sorted((d for d in range(align, hw_p + 1, align) if hw_p % d == 0),
                   reverse=True)
    hw_tile = cands[-1]
    for d in cands:
        if footprint(d) <= budget:
            hw_tile = d
            break

    # Keep both v7x TensorCores busy: need at least 2 grid programs.
    while b * (hw_p // hw_tile) < 2 and hw_tile % (2 * align) == 0:
        hw_tile //= 2
    n_hw = hw_p // hw_tile

    def build(use_roll):
        return pl.pallas_call(
            _make_kernel(fold, use_roll),
            out_shape=jax.ShapeDtypeStruct((b, T, hw_p, c_out_p), out_dtype),
            grid_spec=pltpu.PrefetchScalarGridSpec(
                num_scalar_prefetch=0,
                grid=(b, n_hw),
                in_specs=[
                    pl.BlockSpec((1, T, hw_tile, c), lambda i, j: (i, 0, j, 0)),
                    pl.BlockSpec((c, c_out_p), lambda i, j: (0, 0)),
                    pl.BlockSpec((1, c_out_p), lambda i, j: (0, 0)),
                ],
                out_specs=pl.BlockSpec((1, T, hw_tile, c_out_p),
                                       lambda i, j: (i, 0, j, 0)),
            ),
            compiler_params=pltpu.CompilerParams(
                dimension_semantics=("parallel", "parallel"),
                vmem_limit_bytes=vmem_limit),
        )

    try:
        out = jax.block_until_ready(build(use_roll=True)(x4, Wc, bias2))
    except Exception:
        # pltpu.roll on packed (16-bit) sublanes may not lower on every
        # toolchain; fall back to the semantically identical concat kernel.
        out = jax.block_until_ready(build(use_roll=False)(x4, Wc, bias2))

    out = out[:, :, :hw, :c_out]
    return out.reshape(nt, hw, c_out)


def _reference(x, W, bias, *, num_frames, fold_div, compute_dtype=jnp.bfloat16):
    """Pure-JAX reference mirroring the PyTorch shift + Linear net (same
    bf16 operand / f32 accumulation numerics as the kernel)."""
    nt, hw, c = x.shape
    b = nt // num_frames
    xr = x.reshape(b, num_frames, hw, c)
    fold = c // fold_div
    out = jnp.zeros_like(xr)
    out = out.at[:, :-1, :, :fold].set(xr[:, 1:, :, :fold])
    out = out.at[:, 1:, :, fold:2 * fold].set(xr[:, :-1, :, fold:2 * fold])
    out = out.at[:, :, :, 2 * fold:].set(xr[:, :, :, 2 * fold:])
    shifted = out.reshape(nt, hw, c).astype(compute_dtype)
    y = jnp.dot(shifted, W.astype(compute_dtype),
                preferred_element_type=jnp.float32)
    return (y + bias[None, None, :].astype(jnp.float32)).astype(x.dtype)


if __name__ == "__main__":
    # Small shapes consistent with the module: b=2, t(num_frames)=8 -> nt=16,
    # h=w=4 -> hw=16.  Channels 128 (lane-dense, MXU-friendly), fold_div=8.
    B, T, H, Wd, C = 2, 8, 4, 4, 128
    NT, HW = B * T, H * Wd
    FOLD_DIV = 8

    key = jax.random.PRNGKey(0)
    kx, kw, kb = jax.random.split(key, 3)
    x = jax.random.normal(kx, (NT, HW, C), dtype=jnp.float32)
    # Deterministic "net" parameters (Linear C -> C), stored as (in, out).
    W = jax.random.normal(kw, (C, C), dtype=jnp.float32) / jnp.sqrt(C)
    bias = jax.random.normal(kb, (C,), dtype=jnp.float32) * 0.01

    out = temporal_shift_net(x, W, bias, num_frames=T, fold_div=FOLD_DIV)
    out = jax.block_until_ready(out)

    ref = _reference(x, W, bias, num_frames=T, fold_div=FOLD_DIV,
                     compute_dtype=jnp.bfloat16)
    assert out.shape == (NT, HW, C), out.shape
    max_err = float(jnp.max(jnp.abs(out - ref)))
    assert jnp.allclose(out, ref, atol=2e-2, rtol=2e-2), (
        f"mismatch vs reference, max abs err = {max_err}")

    print("KERNEL_OK")
</pallas_src>

<mosaic_0001>
module attributes {stable_mosaic.version = 11 : i64} {
  func.func @kernel(%arg0: i32, %arg1: i32, %arg2: memref<1x8x16x128xbf16, #tpu.memory_space<vmem>>, %arg3: memref<128x128xbf16, #tpu.memory_space<vmem>>, %arg4: memref<1x128xf32, #tpu.memory_space<vmem>>, %arg5: memref<1x8x16x128xf32, #tpu.memory_space<vmem>>) attributes {dimension_semantics = [#tpu.dimension_semantics<parallel>, #tpu.dimension_semantics<parallel>], iteration_bounds = array<i64: 2, 1>, scalar_prefetch = 0 : i64, scratch_operands = 0 : i64, tpu.core_type = #tpu.core_type<tc>, window_params = [{transform_indices = @transform_0, window_bounds = array<i64: 1, 8, 16, 128>}, {pipeline_mode = #tpu.pipeline_mode<synchronous>, transform_indices = @transform_1, window_bounds = array<i64: 128, 128>}, {pipeline_mode = #tpu.pipeline_mode<synchronous>, transform_indices = @transform_2, window_bounds = array<i64: 1, 128>}, {transform_indices = @transform_3, window_bounds = array<i64: 1, 8, 16, 128>}]} {
    %c0 = arith.constant 0 : index
    %c0_0 = arith.constant 0 : index
    %c0_1 = arith.constant 0 : index
    %c0_2 = arith.constant 0 : index
    %0 = vector.load %arg2[%c0, %c0_0, %c0_1, %c0_2] : memref<1x8x16x128xbf16, #tpu.memory_space<vmem>>, vector<1x8x16x128xbf16>
    %1 = vector.shape_cast %0 : vector<1x8x16x128xbf16> to vector<8x16x128xbf16>
    %2 = vector.shape_cast %1 : vector<8x16x128xbf16> to vector<128x128xbf16>
    %c112_i32 = arith.constant 112 : i32
    %3 = tpu.dynamic_rotate %2 by %c112_i32 dim 0 : vector<128x128xbf16>, i32 -> vector<128x128xbf16>
    %c16_i32 = arith.constant 16 : i32
    %4 = tpu.dynamic_rotate %2 by %c16_i32 dim 0 : vector<128x128xbf16>, i32 -> vector<128x128xbf16>
    %5 = tpu.iota {dimensions = array<i32: 0>} : vector<128x1xi32>
    %c112_i32_3 = arith.constant 112 : i32
    %6 = vector.broadcast %c112_i32_3 : i32 to vector<128x1xi32>
    %7 = arith.cmpi slt, %5, %6 : vector<128x1xi32>
    %cst = arith.constant 0.000000e+00 : bf16
    %8 = vector.shape_cast %7 : vector<128x1xi1> to vector<128x1xi1>
    %9 = vector.broadcast %8 : vector<128x1xi1> to vector<128x128xi1>
    %10 = vector.broadcast %cst : bf16 to vector<128x128xbf16>
    %11 = arith.select %9, %3, %10 : vector<128x128xi1>, vector<128x128xbf16>
    %c16_i32_4 = arith.constant 16 : i32
    %12 = vector.broadcast %c16_i32_4 : i32 to vector<128x1xi32>
    %13 = arith.cmpi sge, %5, %12 : vector<128x1xi32>
    %cst_5 = arith.constant 0.000000e+00 : bf16
    %14 = vector.shape_cast %13 : vector<128x1xi1> to vector<128x1xi1>
    %15 = vector.broadcast %14 : vector<128x1xi1> to vector<128x128xi1>
    %16 = vector.broadcast %cst_5 : bf16 to vector<128x128xbf16>
    %17 = arith.select %15, %4, %16 : vector<128x128xi1>, vector<128x128xbf16>
    %18 = tpu.iota {dimensions = array<i32: 1>} : vector<1x128xi32>
    %c16_i32_6 = arith.constant 16 : i32
    %19 = vector.broadcast %c16_i32_6 : i32 to vector<1x128xi32>
    %20 = arith.cmpi slt, %18, %19 : vector<1x128xi32>
    %c32_i32 = arith.constant 32 : i32
    %21 = vector.broadcast %c32_i32 : i32 to vector<1x128xi32>
    %22 = arith.cmpi slt, %18, %21 : vector<1x128xi32>
    %23 = vector.shape_cast %22 : vector<1x128xi1> to vector<1x128xi1>
    %24 = vector.broadcast %23 : vector<1x128xi1> to vector<128x128xi1>
    %25 = arith.select %24, %17, %2 : vector<128x128xi1>, vector<128x128xbf16>
    %26 = vector.shape_cast %20 : vector<1x128xi1> to vector<1x128xi1>
    %27 = vector.broadcast %26 : vector<1x128xi1> to vector<128x128xi1>
    %28 = arith.select %27, %11, %25 : vector<128x128xi1>, vector<128x128xbf16>
    %c0_7 = arith.constant 0 : index
    %c0_8 = arith.constant 0 : index
    %29 = vector.load %arg3[%c0_7, %c0_8] : memref<128x128xbf16, #tpu.memory_space<vmem>>, vector<128x128xbf16>
    %cst_9 = arith.constant dense<0.000000e+00> : vector<128x128xf32>
    %30 = tpu.matmul %28, %29, %cst_9 {dimension_numbers = #tpu.dot_dimension_numbers<[1], [0], [0], [1], [0, 0, 1, 1], [], []>} : vector<128x128xbf16>, vector<128x128xbf16>, vector<128x128xf32> -> vector<128x128xf32>
    %c0_10 = arith.constant 0 : index
    %c0_11 = arith.constant 0 : index
    %31 = vector.load %arg4[%c0_10, %c0_11] : memref<1x128xf32, #tpu.memory_space<vmem>>, vector<1x128xf32>
    %32 = vector.broadcast %31 : vector<1x128xf32> to vector<128x128xf32>
    %33 = arith.addf %30, %32 : vector<128x128xf32>
    %34 = vector.shape_cast %33 : vector<128x128xf32> to vector<8x16x128xf32>
    %c0_12 = arith.constant 0 : index
    %c0_13 = arith.constant 0 : index
    %c0_14 = arith.constant 0 : index
    %c0_15 = arith.constant 0 : index
    %35 = vector.load %arg5[%c0_12, %c0_13, %c0_14, %c0_15] : memref<1x8x16x128xf32, #tpu.memory_space<vmem>>, vector<1x8x16x128xf32>
    %36 = vector.shape_cast %35 : vector<1x8x16x128xf32> to vector<8x16x128xf32>
    %37 = vector.shape_cast %34 : vector<8x16x128xf32> to vector<1x8x16x128xf32>
    tpu.vector_store %arg5[%c0_12, %c0_13, %c0_14, %c0_15], %37 {strides = array<i32>} : memref<1x8x16x128xf32, #tpu.memory_space<vmem>>, vector<1x8x16x128xf32>,
    return
  }
  func.func @transform_0(%arg0: i32, %arg1: i32) -> (i32, i32, i32, i32) {
    %c0_i32 = arith.constant 0 : i32
    %c0_i32_0 = arith.constant 0 : i32
    %c0_i32_1 = arith.constant 0 : i32
    return %arg0, %c0_i32, %arg1, %c0_i32_0 : i32, i32, i32, i32
  }
  func.func @transform_1(%arg0: i32, %arg1: i32) -> (i32, i32) {
    %c0_i32 = arith.constant 0 : i32
    %c0_i32_0 = arith.constant 0 : i32
    %c0_i32_1 = arith.constant 0 : i32
    return %c0_i32, %c0_i32_0 : i32, i32
  }
  func.func @transform_2(%arg0: i32, %arg1: i32) -> (i32, i32) {
    %c0_i32 = arith.constant 0 : i32
    %c0_i32_0 = arith.constant 0 : i32
    %c0_i32_1 = arith.constant 0 : i32
    return %c0_i32, %c0_i32_0 : i32, i32
  }
  func.func @transform_3(%arg0: i32, %arg1: i32) -> (i32, i32, i32, i32) {
    %c0_i32 = arith.constant 0 : i32
    %c0_i32_0 = arith.constant 0 : i32
    %c0_i32_1 = arith.constant 0 : i32
    return %arg0, %c0_i32, %arg1, %c0_i32_0 : i32, i32, i32, i32
  }
}

module attributes {stable_mosaic.version = 11 : i64} {
  func.func @kernel(%arg0: i32, %arg1: i32, %arg2: memref<1x8x16x128xbf16, #tpu.memory_space<vmem>>, %arg3: memref<128x128xbf16, #tpu.memory_space<vmem>>, %arg4: memref<1x128xf32, #tpu.memory_space<vmem>>, %arg5: memref<1x8x16x128xf32, #tpu.memory_space<vmem>>) attributes {dimension_semantics = [#tpu.dimension_semantics<parallel>, #tpu.dimension_semantics<parallel>], iteration_bounds = array<i64: 2, 1>, scalar_prefetch = 0 : i64, scratch_operands = 0 : i64, tpu.core_type = #tpu.core_type<tc>, window_params = [{transform_indices = @transform_0, window_bounds = array<i64: 1, 8, 16, 128>}, {pipeline_mode = #tpu.pipeline_mode<synchronous>, transform_indices = @transform_1, window_bounds = array<i64: 128, 128>}, {pipeline_mode = #tpu.pipeline_mode<synchronous>, transform_indices = @transform_2, window_bounds = array<i64: 1, 128>}, {transform_indices = @transform_3, window_bounds = array<i64: 1, 8, 16, 128>}]} {
    %c0 = arith.constant 0 : index
    %c0_0 = arith.constant 0 : index
    %c0_1 = arith.constant 0 : index
    %c0_2 = arith.constant 0 : index
    %0 = vector.load %arg2[%c0, %c0_0, %c0_1, %c0_2] : memref<1x8x16x128xbf16, #tpu.memory_space<vmem>>, vector<1x8x16x128xbf16>
    %1 = vector.shape_cast %0 : vector<1x8x16x128xbf16> to vector<8x16x128xbf16>
    %2 = vector.shape_cast %1 : vector<8x16x128xbf16> to vector<128x128xbf16>
    %cst = arith.constant 0.000000e+00 : bf16
    %3 = vector.broadcast %cst : bf16 to vector<16x128xbf16>
    %4 = vector.extract_strided_slice %2 {offsets = [16, 0], sizes = [112, 128], strides = [1, 1]} : vector<128x128xbf16> to vector<112x128xbf16>
    %5 = tpu.concatenate %4, %3 in 0 : vector<112x128xbf16>, vector<16x128xbf16> -> vector<128x128xbf16>
    %6 = vector.extract_strided_slice %2 {offsets = [0, 0], sizes = [112, 128], strides = [1, 1]} : vector<128x128xbf16> to vector<112x128xbf16>
    %7 = tpu.concatenate %3, %6 in 0 : vector<16x128xbf16>, vector<112x128xbf16> -> vector<128x128xbf16>
    %8 = tpu.iota {dimensions = array<i32: 1>} : vector<1x128xi32>
    %c16_i32 = arith.constant 16 : i32
    %9 = vector.broadcast %c16_i32 : i32 to vector<1x128xi32>
    %10 = arith.cmpi slt, %8, %9 : vector<1x128xi32>
    %c32_i32 = arith.constant 32 : i32
    %11 = vector.broadcast %c32_i32 : i32 to vector<1x128xi32>
    %12 = arith.cmpi slt, %8, %11 : vector<1x128xi32>
    %13 = vector.shape_cast %12 : vector<1x128xi1> to vector<1x128xi1>
    %14 = vector.broadcast %13 : vector<1x128xi1> to vector<128x128xi1>
    %15 = arith.select %14, %7, %2 : vector<128x128xi1>, vector<128x128xbf16>
    %16 = vector.shape_cast %10 : vector<1x128xi1> to vector<1x128xi1>
    %17 = vector.broadcast %16 : vector<1x128xi1> to vector<128x128xi1>
    %18 = arith.select %17, %5, %15 : vector<128x128xi1>, vector<128x128xbf16>
    %c0_3 = arith.constant 0 : index
    %c0_4 = arith.constant 0 : index
    %19 = vector.load %arg3[%c0_3, %c0_4] : memref<128x128xbf16, #tpu.memory_space<vmem>>, vector<128x128xbf16>
    %cst_5 = arith.constant dense<0.000000e+00> : vector<128x128xf32>
    %20 = tpu.matmul %18, %19, %cst_5 {dimension_numbers = #tpu.dot_dimension_numbers<[1], [0], [0], [1], [0, 0, 1, 1], [], []>} : vector<128x128xbf16>, vector<128x128xbf16>, vector<128x128xf32> -> vector<128x128xf32>
    %c0_6 = arith.constant 0 : index
    %c0_7 = arith.constant 0 : index
    %21 = vector.load %arg4[%c0_6, %c0_7] : memref<1x128xf32, #tpu.memory_space<vmem>>, vector<1x128xf32>
    %22 = vector.broadcast %21 : vector<1x128xf32> to vector<128x128xf32>
    %23 = arith.addf %20, %22 : vector<128x128xf32>
    %24 = vector.shape_cast %23 : vector<128x128xf32> to vector<8x16x128xf32>
    %c0_8 = arith.constant 0 : index
    %c0_9 = arith.constant 0 : index
    %c0_10 = arith.constant 0 : index
    %c0_11 = arith.constant 0 : index
    %25 = vector.load %arg5[%c0_8, %c0_9, %c0_10, %c0_11] : memref<1x8x16x128xf32, #tpu.memory_space<vmem>>, vector<1x8x16x128xf32>
    %26 = vector.shape_cast %25 : vector<1x8x16x128xf32> to vector<8x16x128xf32>
    %27 = vector.shape_cast %24 : vector<8x16x128xf32> to vector<1x8x16x128xf32>
    tpu.vector_store %arg5[%c0_8, %c0_9, %c0_10, %c0_11], %27 {strides = array<i32>} : memref<1x8x16x128xf32, #tpu.memory_space<vmem>>, vector<1x8x16x128xf32>,
    return
  }
  func.func @transform_0(%arg0: i32, %arg1: i32) -> (i32, i32, i32, i32) {
    %c0_i32 = arith.constant 0 : i32
    %c0_i32_0 = arith.constant 0 : i32
    %c0_i32_1 = arith.constant 0 : i32
    return %arg0, %c0_i32, %arg1, %c0_i32_0 : i32, i32, i32, i32
  }
  func.func @transform_1(%arg0: i32, %arg1: i32) -> (i32, i32) {
    %c0_i32 = arith.constant 0 : i32
    %c0_i32_0 = arith.constant 0 : i32
    %c0_i32_1 = arith.constant 0 : i32
    return %c0_i32, %c0_i32_0 : i32, i32
  }
  func.func @transform_2(%arg0: i32, %arg1: i32) -> (i32, i32) {
    %c0_i32 = arith.constant 0 : i32
    %c0_i32_0 = arith.constant 0 : i32
    %c0_i32_1 = arith.constant 0 : i32
    return %c0_i32, %c0_i32_0 : i32, i32
  }
  func.func @transform_3(%arg0: i32, %arg1: i32) -> (i32, i32, i32, i32) {
    %c0_i32 = arith.constant 0 : i32
    %c0_i32_0 = arith.constant 0 : i32
    %c0_i32_1 = arith.constant 0 : i32
    return %arg0, %c0_i32, %arg1, %c0_i32_0 : i32, i32, i32, i32
  }
}

</mosaic_0001>

<bundles_post_ra>
// kernel: tpu_custom_call.1
= control target key start
LH: loop header
LB: loop body
LE: loop exit
PB: predicated region body
PF: predicated region fallthrough
CT: control target
= control target key end

     0   :  { %8 = vsyncpa [#allocation3], 0  ;;  %s1248_s0 = inlined_call_operand.hbm [shape: bf16[2,8,16,128], index: 0, kind: input, shape index: {}]   ;;  %s1249_s1 = inlined_call_operand.hbm [shape: bf16[128,128], index: 1, kind: input, shape index: {}]   ;;  %s1250_s2 = inlined_call_operand.vmem [shape: f32[1,128], index: 2, kind: input, shape index: {}]   ;;  %s1251_s3 = inlined_call_operand.hbm [shape: f32[2,8,16,128], index: 3, kind: output, shape index: {}]  }
   0x1   :  { %10 = vsyncpa [#allocation3 + $0x1], 0 }
   0x2   :  { %11 = vsyncpa [#allocation6], 0 }
   0x3   :  { %12 = vsyncpa [#allocation4], 0 }
   0x4   :  { %14 = vsyncpa [#allocation4 + $0x1], 0  ;;  %s990_s12 = smov 0   ;;  %s992_s13 = smov 0  }
   0x5   :  { %s994_s14 = smov 0   ;;  %s996_s15 = smov 0  }
   0x6   :  { %s998_s16 = smov 0   ;;  %s1000_s17 = smov 0  }
   0x7 LB: > { %s626_s18 = sadd.s32 4294967295, %s960_s17   ;;  %s627_s19 = sadd.s32 4294967294, %s960_s17   ;;  %s960_s17 = sphi %s1000_s17, %s20_s17   ;;  %s956_s16 = sphi %s998_s16, %s1273_s16   ;;  %s952_s15 = sphi %s996_s15, %s1272_s15   ;;  %s948_s14 = sphi %s994_s14, %s1271_s14   ;;  %s944_s13 = sphi %s992_s13, %s1270_s13   ;;  %s940_s12 = sphi %s990_s12, %s1269_s12  }
   0x8   : > { %p54_p0 = scmp.ne.s32.totalorder %s944_s13, %s940_s12  ;;  %p1024_p1 = scmp.eq.s32.totalorder %s626_s18, 0 }
   0x9   : > { %p1028_p2 = scmp.eq.s32.totalorder %s626_s18, 1  ;;  %p128_p3 = scmp.eq.s32.totalorder %s627_s19, 1 }
   0xa   : > { %p1034_p4 = por %p1024_p1, %p54_p0  ;;  %p628_p5 = scmp.ge.s32.totalorder %s960_s17, 1 }
   0xb   : > { %p1039_p6 = por %p128_p3, %p54_p0  ;;  %p135_p7 = scmp.lt.s32.totalorder %s960_s17, 3 }
   0xc   : > { %s1257_s22 = scalar_select %p1034_p4, 1, 0 }
   0xd   : > { %s1258_s23 = scalar_select %p1039_p6, 1, 0 }
   0xe   : > { %p1044_p8 = pnand %p628_p5, %p135_p7  ;;  %s962_s25 = smov [#allocation5]  }
   0xf   : > { %s147_s26 = sshll.u32 %s962_s25, 4  ;;  %s32_s28 = sadd.s32 1, %s956_s16  ;;  %s148_s26 = int_to_ptr.vmem [resolvable:$true] %s147_s26 }
  0x10   : > { %p736_p9 = pneg %p1044_p8  ;;  %s833_s29 = scalar_lea.vmem %s148_s26, 1024 }
  0x11   : > { %p834_p13 = scmp.ne.s32.totalorder %s148_s26, %s833_s29  ;;  %p841_p5 = scmp.lt.s32.totalorder %s148_s26, %s148_s26 }
  0x12   : > { %p1053_p11 = pnand %p736_p9, %p1024_p1  ;;  %p842_p7 = scmp.lt.s32.totalorder %s833_s29, %s833_s29 }
  0x14   : > { %p824_p12 = pneg %p1053_p11  ;;  %p843_p6 = por %p842_p7, %p841_p5 }
  0x16   : > { %p836_p0 = pnand %p834_p13, %p824_p12 }
  0x18   : > { %p837_p3 = pneg %p836_p0 }
  0x1a   : > { %p844_p4 = pnand %p843_p6, %p837_p3 }
  0x1c   : > { %847 = shalt.err (!%p844_p4)
}
  0x1d   : > { %s1253_s30 = smov 64   ;;  %s1254_s4 = smov 4  }
  0x1e   : > { %739 = dma.hbm_to_vmem [thread:$0]  (!%p1053_p11), %s1249_s1, 1024, %s148_s26, [#allocation6], %s1253_s30, %s1253_s30, %s1254_s4  }
  0x1f   : > { %p34_p4 = scmp.ge.s32.totalorder %s32_s28, 2  ;;  %s41_s7 = sadd.s32 1, %s948_s14 }
  0x20   : > { %p48_p6 = scmp.ne.s32.totalorder %s948_s14, %s944_s13  ;;  %p49_p9 = scmp.eq.s32.totalorder %s960_s17, 0 }
  0x21   : > { %s1275_s28 = smov (%p34_p4, %s32_s28), 0  ;;  %p749_p0 = scmp.lt.s32.totalorder %s960_s17, 2 }
  0x22   : > { %p1074_p12 = por %p49_p9, %p48_p6  ;;  %p1080_p13 = por %p1028_p2, %p48_p6 }
  0x23   : > { %s36_s10 = ssub.s32 %s956_s16, %s1275_s28  ;;  %s164_s11 = sand.u32 1, %s948_s14  }
  0x24   : > { %p39_p11 = scmp.eq.s32.totalorder %s36_s10, 0  ;;  %s631_s18 = sshll.u32 %s164_s11, 6 }
  0x25   : > { %s662_s25 = sshll.u32 %s956_s16, 10  ;;  %s168_s5 = scalar_lea.vmem [#allocation2], %s631_s18 }
  0x26   : > { %s1089_s19 = scalar_select %p39_p11, %s948_s14, %s41_s7  }
  0x27   : > { %s176_s29 = scalar_lea.hbm %s1248_s0, %s662_s25  ;;  %s177_s6 = sshll.u32 %s168_s5, 4  ;;  %s178_s6 = int_to_ptr.vmem [resolvable:$true] %s177_s6 }
  0x28   : > { %p1097_p2 = pnand %p749_p0, %p1074_p12  ;;  %s165_s30 = scalar_lea.sflag [#allocation3], %s164_s11 }
  0x29   : > { %s861_s10 = scalar_lea.vmem %s178_s6, 1024  ;;  %s965_s7 = smov [#allocation2]  }
  0x2a   : > { %p850_p3 = pneg %p1097_p2  ;;  %p862_p5 = scmp.ne.s32.totalorder %s178_s6, %s861_s10 }
  0x2b   : > { %s866_s4 = sshll.u32 %s965_s7, 4  ;;  %s867_s4 = int_to_ptr.vmem [resolvable:$false] %s866_s4 }
  0x2c   : > { %p864_p7 = pnand %p862_p5, %p850_p3  ;;  %s868_s25 = scalar_lea.vmem %s867_s4, 2048 }
  0x2d   : > { %p869_p6 = scmp.lt.s32.totalorder %s178_s6, %s867_s4  ;;  %p870_p9 = scmp.lt.s32.totalorder %s868_s25, %s861_s10 }
  0x2e   : > { %p865_p4 = pneg %p864_p7 }
  0x2f   : > { %p871_p11 = por %p870_p9, %p869_p6 }
  0x31   : > { %p872_p10 = pnand %p871_p11, %p865_p4 }
  0x33   : > { %875 = shalt.err (!%p872_p10)
}
  0x34   : > { %s1264_s8 = smov 4   ;;  %s1265_s18 = smov 64  }
  0x35   : > { %743 = dma.hbm_to_vmem [thread:$0]  (!%p1097_p2), %s176_s29, 1024, %s178_s6, %s165_s30, %s1265_s18, %s1265_s18, %s1264_s8  }
  0x36   : > { %189 = sbr.rel (%p1044_p8) target bundleno = 318 (0x13e), region = 32  ;;  %s1111_s11 = sand.u32 (!%p1044_p8), 1, %s944_s13  }
  0x37   : > { %s635_s4 = sshll.u32 (!%p1044_p8), %s1111_s11, 6  ;;  %s192_s26 = scalar_lea.sflag (!%p1044_p8), [#allocation3], %s1111_s11 }
  0x38   : > { %s1115_s27 = scalar_lea.vmem (!%p1044_p8), [#allocation2], %s635_s4  ;;  %p1266_p10 = scmp.ne.s32.totalorder (!%p1044_p8), %s1257_s22, 0 }
  0x3b   : > { %927 = dma.done.wait (%p1266_p10), %s192_s26, 1024  }
  0x3c   : > { %929 = vsyncadd (%p1266_p10), %s192_s26, 4294966272 }
  0x3d   : > { %931 = dma.done.wait (%p1024_p1), [#allocation6], 1024  }
  0x3e   : > { %933 = vsyncadd (%p1024_p1), [#allocation6], 4294966272  ;;  %v291_v0 = vlaneseq  ;;  %v806_v4 = vld [vmem:[#allocation5 + $0x38] sm:$0xff]   ;;  %v966_v5 = vmov 0   ;;  %v807_v7 = vld [vmem:[#allocation5 + $0x30] sm:$0xff]   ;;  %s637_s20 = sshll.u32 %s1111_s11, 7 }
  0x3f   : > { %680 = vmatprep.subr.bf16.mxu0 %v806_v4  ;;  %712 = vmatprep.subr.bf16.mxu1 %v806_v4  ;;  %v808_v10 = vld [vmem:[#allocation5 + $0x28] sm:$0xff]   ;;  %v809_v12 = vld [vmem:[#allocation5 + $0x20] sm:$0xff]   ;;  %v810_v15 = vld [vmem:[#allocation5 + $0x18] sm:$0xff]   ;;  %s1175_s30 = scalar_lea.vmem [#allocation7], %s637_s20  ;;  %s663_s29 = sshll.u32 %s952_s15, 11 }
  0x40   : > { %v292_v1 = vand.u32 127, %v291_v0  ;;  %v300_v2 = vshrl.u32 %v291_v0, 7  ;;  %681 = vmatpush3.bf16.msra.mxu0 %v806_v4  ;;  %720 = vmatpush3.bf16.msra.mxu1 %v806_v4  ;;  %v814_v13 = vld [vmem:[%s1115_s27 + $0x8] sm:$0xff]   ;;  %v815_v14 = vld [vmem:[%s1115_s27] sm:$0xff]   ;;  %v816_v17 = vld [vmem:[%s1115_s27 + $0x18] sm:$0xff]   ;;  %s529_s5 = sshll.u32 %s1175_s30, 4  ;;  %s1194_s10 = scalar_lea.hbm %s1251_s3, %s663_s29  ;;  %s1196_s5 = int_to_ptr.vmem [resolvable:$true] %s529_s5 }
  0x41   : > { %682 = vmatprep.subr.bf16.mxu0 %v807_v7  ;;  %713 = vmatprep.subr.bf16.mxu1 %v807_v7  ;;  %v817_v19 = vld [vmem:[%s1115_s27 + $0x20] sm:$0xff]   ;;  %v818_v20 = vld [vmem:[%s1115_s27 + $0x28] sm:$0xff]   ;;  %v811_v23 = vld [vmem:[#allocation5 + $0x10] sm:$0xff]   ;;  %s514_s15 = scalar_lea.sflag [#allocation4], %s1111_s11  ;;  %s876_s7 = scalar_lea.vmem %s1196_s5, 2048 }
  0x42   : > { %vm293_vm0 = vcmp.lt.s32.totalorder %v292_v1, 16  ;;  %vm294_vm1 = vcmp.lt.s32.totalorder %v292_v1, 32  ;;  %v301_v3 = vsub.s32 0, %v300_v2  ;;  %v812_v24 = vld [vmem:[#allocation5 + $0x8] sm:$0xff]   ;;  %v813_v25 = vld [vmem:[#allocation5] sm:$0xff]   ;;  %v819_v26 = vld [vmem:[%s1115_s27 + $0x10] sm:$0xff]   ;;  %p877_p1 = scmp.ne.s32.totalorder %s1196_s5, %s876_s7 }
  0x43   : > { %vm297_vm2 = vmpackc.low %vm294_vm1, %vm294_vm1  ;;  %v820_v27 = vld [vmem:[%s1115_s27 + $0x30] sm:$0xff]   ;;  %v821_v30 = vld [vmem:[%s1115_s27 + $0x38] sm:$0xff]   ;;  %s967_s25 = smov [#allocation7]  }
  0x44   : > { %vm314_vm3 = vmpackc.low %vm293_vm0, %vm293_vm0  ;;  %v298_v6 = vsel %vm297_vm2, 65537, %v966_v5  ;;  %683 = vmatpush3.bf16.msra.mxu0 %v807_v7  ;;  %721 = vmatpush3.bf16.msra.mxu1 %v807_v7  ;;  %v646_v40 = vld [vmem:[%s1250_s2] ss:$0 sm:$0xff]  ;;  %p878_p8 = pnand %p877_p1, %p1080_p13  ;;  %s880_s8 = sshll.u32 %s967_s25, 4  ;;  %s881_s8 = int_to_ptr.vmem [resolvable:$false] %s880_s8 }
  0x45   : > { %v315_v8 = vsel %vm314_vm3, 65537, %v966_v5  ;;  %v1125_v9 = vrot.slane %v298_v6, %v301_v3  ;;  %684 = vmatprep.subr.bf16.mxu0 %v808_v10  ;;  %714 = vmatprep.subr.bf16.mxu1 %v808_v10  ;;  %s882_s18 = scalar_lea.vmem %s881_s8, 4096  ;;  %p883_p0 = scmp.lt.s32.totalorder %s1196_s5, %s881_s8 }
  0x46   : > { %v1127_v11 = vrot.slane %v315_v8, %v301_v3  ;;  %p879_p12 = pneg %p878_p8  ;;  %p884_p2 = scmp.lt.s32.totalorder %s882_s18, %s876_s7 }
  0x47   : > { %vm303_vm4 = vcmp.ne.s16.totalorder %v1125_v9, 0 }
  0x48   : > { %vm320_vm5 = vcmp.ne.s16.totalorder %v1127_v11, 0  ;;  %685 = vmatpush3.bf16.msra.mxu0 %v808_v10  ;;  %722 = vmatpush3.bf16.msra.mxu1 %v808_v10  ;;  %v304_v16 = vsel %vm303_vm4, 0, %v815_v14  ;;  %v308_v21 = vsel %vm303_vm4, %v816_v17, %v817_v19  ;;  %v305_v28 = vsel %vm303_vm4, %v815_v14, %v814_v13  ;;  %p885_p3 = por %p884_p2, %p883_p0 }
  0x49   : > { %686 = vmatprep.subr.bf16.mxu0 %v809_v12  ;;  %715 = vmatprep.subr.bf16.mxu1 %v809_v12  ;;  %v321_v18 = vsel %vm320_vm5, %v814_v13, %v304_v16  ;;  %v325_v22 = vsel %vm320_vm5, %v818_v20, %v308_v21  ;;  %v309_v29 = vsel %vm303_vm4, %v817_v19, %v818_v20  ;;  %vm655_vm6 = vmneg %vm320_vm5 }
  0x4a   : > { %696 = vmatprep.mubr.bf16.mxu0 %v321_v18  ;;  %704 = vmatprep.mubr.bf16.mxu1 %v325_v22  ;;  %v306_v31 = vsel %vm303_vm4, %v814_v13, %v819_v26  ;;  %v310_v32 = vsel %vm303_vm4, %v818_v20, %v820_v27  ;;  %v322_v33 = vsel %vm320_vm5, %v819_v26, %v305_v28  ;;  %p886_p5 = pnand %p885_p3, %p879_p12 }
  0x4b   : > { %v326_v34 = vsel %vm320_vm5, %v820_v27, %v309_v29  ;;  %v323_v35 = vsel %vm320_vm5, %v816_v17, %v306_v31  ;;  %v327_v36 = vsel %vm320_vm5, %v821_v30, %v310_v32  ;;  %v307_v37 = vsel %vm303_vm4, %v819_v26, %v816_v17 }
  0x4c   : > { %687 = vmatpush3.bf16.msra.mxu0 %v809_v12  ;;  %723 = vmatpush3.bf16.msra.mxu1 %v809_v12  ;;  %v324_v38 = vsel %vm320_vm5, %v817_v19, %v307_v37  ;;  %v311_v39 = vsel %vm303_vm4, %v820_v27, %v821_v30 }
  0x4d   : > { %688 = vmatprep.subr.bf16.mxu0 %v810_v15  ;;  %716 = vmatprep.subr.bf16.mxu1 %v810_v15 }
  0x50   : > { %689 = vmatpush3.bf16.msra.mxu0 %v810_v15  ;;  %724 = vmatpush3.bf16.msra.mxu1 %v810_v15 }
  0x51   : > { %690 = vmatprep.subr.bf16.mxu0 %v811_v23  ;;  %717 = vmatprep.subr.bf16.mxu1 %v811_v23 }
  0x54   : > { %691 = vmatpush3.bf16.msra.mxu0 %v811_v23  ;;  %725 = vmatpush3.bf16.msra.mxu1 %v811_v23 }
  0x55   : > { %692 = vmatprep.subr.bf16.mxu0 %v812_v24  ;;  %718 = vmatprep.subr.bf16.mxu1 %v812_v24 }
  0x58   : > { %693 = vmatpush3.bf16.msra.mxu0 %v812_v24  ;;  %726 = vmatpush3.bf16.msra.mxu1 %v812_v24 }
  0x59   : > { %694 = vmatprep.subr.bf16.mxu0 %v813_v25  ;;  %719 = vmatprep.subr.bf16.mxu1 %v813_v25 }
  0x5c   : > { %695 = vmatpush3.bf16.msra.mxu0 %v813_v25  ;;  %727 = vmatpush3.bf16.msra.mxu1 %v813_v25 }
  0x5f   : > { %697 = vmatmul.mubr.bf16.vlgmr.msra.gmra.mxu0 %v322_v33  ;;  %705 = vmatmul.mubr.bf16.vlgmr.msra.gmra.mxu1 %v326_v34 }
  0x60   : > { %700 = vmatprep.mubr.bf16.mxu0 %v323_v35  ;;  %708 = vmatprep.mubr.bf16.mxu1 %v327_v36 }
  0x67   : > { %701 = vmatmul.mubr.bf16.gmra.mxu0 %v324_v38  ;;  %709 = vmatmul.mubr.msk.bf16.gmra.mxu1 %vm655_vm6, %v311_v39 }
 0x11f   : > { %v698_v41 = vpop.f32.mrf.mxu0  ;;  %v706_v42 = vpop.f32.mrf.mxu1 }
 0x120   : > { %v443_v43 = vadd.f32 %v698_v41, %v646_v40  ;;  %v475_v44 = vadd.f32 %v706_v42, %v646_v40 }
 0x121   : > { %v434_v45 = vpop.f32.mrf.mxu0  ;;  %v466_v46 = vpop.f32.mrf.mxu1 }
 0x122   : > { %499 = vst [vmem:[%s1175_s30 + $0x10] sm:$0xff] %v443_v43  ;;  %507 = vst [vmem:[%s1175_s30 + $0x50] sm:$0xff] %v475_v44  ;;  %v435_v47 = vadd.f32 %v646_v40, %v434_v45  ;;  %v467_v48 = vadd.f32 %v646_v40, %v466_v46 }
 0x123   : > { %v699_v49 = vpop.f32.mrf.mxu0  ;;  %v707_v50 = vpop.f32.mrf.mxu1 }
 0x124   : > { %497 = vst [vmem:[%s1175_s30] sm:$0xff] %v435_v47  ;;  %505 = vst [vmem:[%s1175_s30 + $0x40] sm:$0xff] %v467_v48  ;;  %v446_v51 = vadd.f32 %v699_v49, %v646_v40  ;;  %v478_v52 = vadd.f32 %v707_v50, %v646_v40 }
 0x125   : > { %v437_v53 = vpop.f32.mrf.mxu0  ;;  %v469_v54 = vpop.f32.mrf.mxu1 }
 0x126   : > { %500 = vst [vmem:[%s1175_s30 + $0x18] sm:$0xff] %v446_v51  ;;  %508 = vst [vmem:[%s1175_s30 + $0x58] sm:$0xff] %v478_v52  ;;  %v438_v55 = vadd.f32 %v646_v40, %v437_v53  ;;  %v470_v56 = vadd.f32 %v646_v40, %v469_v54 }
 0x127   : > { %v702_v57 = vpop.f32.mrf.mxu0  ;;  %v710_v58 = vpop.f32.mrf.mxu1 }
 0x128   : > { %498 = vst [vmem:[%s1175_s30 + $0x8] sm:$0xff] %v438_v55  ;;  %506 = vst [vmem:[%s1175_s30 + $0x48] sm:$0xff] %v470_v56  ;;  %v459_v59 = vadd.f32 %v702_v57, %v646_v40  ;;  %v491_v60 = vadd.f32 %v710_v58, %v646_v40 }
 0x129   : > { %v450_v61 = vpop.f32.mrf.mxu0  ;;  %v482_v62 = vpop.f32.mrf.mxu1 }
 0x12a   : > { %503 = vst [vmem:[%s1175_s30 + $0x30] sm:$0xff] %v459_v59  ;;  %511 = vst [vmem:[%s1175_s30 + $0x70] sm:$0xff] %v491_v60  ;;  %v451_v63 = vadd.f32 %v646_v40, %v450_v61  ;;  %v483_v0 = vadd.f32 %v646_v40, %v482_v62 }
 0x12b   : > { %v703_v1 = vpop.f32.mrf.mxu0  ;;  %v711_v2 = vpop.f32.mrf.mxu1 }
 0x12c   : > { %501 = vst [vmem:[%s1175_s30 + $0x20] sm:$0xff] %v451_v63  ;;  %509 = vst [vmem:[%s1175_s30 + $0x60] sm:$0xff] %v483_v0  ;;  %v462_v3 = vadd.f32 %v703_v1, %v646_v40  ;;  %v494_v4 = vadd.f32 %v711_v2, %v646_v40 }
 0x12d   : > { %v453_v5 = vpop.f32.mrf.mxu0  ;;  %v485_v6 = vpop.f32.mrf.mxu1 }
 0x12e   : > { %504 = vst [vmem:[%s1175_s30 + $0x38] sm:$0xff] %v462_v3  ;;  %512 = vst [vmem:[%s1175_s30 + $0x78] sm:$0xff] %v494_v4  ;;  %v454_v7 = vadd.f32 %v646_v40, %v453_v5  ;;  %v486_v8 = vadd.f32 %v646_v40, %v485_v6 }
 0x130   : > { %502 = vst [vmem:[%s1175_s30 + $0x28] sm:$0xff] %v454_v7  ;;  %510 = vst [vmem:[%s1175_s30 + $0x68] sm:$0xff] %v486_v8 }
 0x131   : > { %889 = shalt.err (!%p886_p5)
}
 0x132   : > { %s890_s4 = scalar_lea.hbm %s1194_s10, 2048  ;;  %s894_s20 = scalar_lea.hbm %s1251_s3, 4096 }
 0x133   : > { %p891_p7 = scmp.ne.s32.totalorder %s1194_s10, %s890_s4  ;;  %p895_p9 = scmp.lt.s32.totalorder %s1194_s10, %s1251_s3 }
 0x134   : > { %p896_p11 = scmp.lt.s32.totalorder %s894_s20, %s890_s4 }
 0x135   : > { %p892_p4 = pnand %p891_p7, %p1080_p13 }
 0x136   : > { %p897_p10 = por %p896_p11, %p895_p9 }
 0x137   : > { %p893_p6 = pneg %p892_p4 }
 0x139   : > { %p898_p1 = pnand %p897_p10, %p893_p6 }
 0x13b   : > { %901 = shalt.err (!%p898_p1)
}
 0x13c   : > { %s968_s30 = smov 128   ;;  %s969_s29 = smov 8  }
 0x13d   : > { %734 = dma.vmem_to_hbm [thread:$0]  (%p1080_p13), %s1196_s5, 2048, %s1194_s10, %s514_s15, %s968_s30, %s968_s30, %s969_s29  }
 0x13e PF: > { %s544_s6 = sand.u32 1, %s940_s12   ;;  %p1267_p8 = scmp.ne.s32.totalorder %s1258_s23, 0 }
 0x13f   : > { %p1268_p12 = scmp.ge.s32.totalorder %s960_s17, 2  ;;  %s545_s21 = scalar_lea.sflag [#allocation4], %s544_s6 }
 0x141   : > { %p745_p0 = pnand %p1268_p12, %p1267_p8 }
 0x143   : > { %p746_p2 = pneg %p745_p0 }
 0x145   : > { %935 = dma.done.wait (%p746_p2), %s545_s21, 2048  }
 0x146   : > { %937 = vsyncadd (%p746_p2), %s545_s21, 4294965248  ;;  %s20_s17 = sadd.s32 1, %s960_s17   ;;  %s1269_s12 = smov %s944_s13 }
 0x147   : > { %p17_p3 = scmp.ge.s32.totalorder %s20_s17, 4   ;;  %s1270_s13 = smov %s948_s14 }
 0x148   : > { %s1271_s14 = smov %s1089_s19  ;;  %s1272_s15 = smov %s956_s16 }
 0x149   : > { %s1273_s16 = smov %s1275_s28  ;;  %19 = sbr.rel (!%p17_p3) target bundleno = 7 (0x7), region = 81 }
 0x14e   :  { %550 = vsyncpa [#allocation3], 1 }
 0x14f   :  { %552 = vsyncpa [#allocation3 + $0x1], 1 }
 0x150   :  { %553 = vsyncpa [#allocation6], 1 }
 0x151   :  { %554 = vsyncpa [#allocation4], 1 }
 0x152   :  { %556 = vsyncpa [#allocation4 + $0x1], 1 }

</bundles_post_ra>
